<compile_context>
chip_gen: v7x
topology: tpu7x:2x2x1
jax: 0.10.0
libtpu: 0.0.40
codegen_flags: <defaults>
</compile_context>

<pallas_src>
import functools

import jax
import jax.numpy as jnp
from jax import lax
from jax.experimental import pallas as pl
from jax.experimental.pallas import tpu as pltpu


_MAX_ROW_TILE = 4096  # multiple of 8; ~8 MiB double-buffered VMEM footprint at f32


def _pinball_kernel(q_ref, obs_ref, mod_ref, out_ref, acc_ref, *, row_tile, n_rows):
    # q_ref:   VMEM (1, Q)         quantile values (f32)
    # obs_ref: VMEM (row_tile, 1)  squeezed observed rows (producer dtype)
    # mod_ref: VMEM (row_tile, Q)  modeled rows, native (B*T, Q) layout
    # out_ref: VMEM (1, Q)         per-quantile pinball loss
    # acc_ref: VMEM (1, Q) f32     running nansum(observed - modeled[:, q])
    i = pl.program_id(0)

    @pl.when(i == 0)
    def _():
        acc_ref[...] = jnp.zeros_like(acc_ref)

    obs = obs_ref[...].astype(jnp.float32)          # (row_tile, 1)
    mod = mod_ref[...].astype(jnp.float32)          # (row_tile, Q)
    d = obs - mod                                   # NaN wherever either input is NaN

    # nansum semantics (NaNs contribute 0) + mask rows past the end of the array
    # (the last tile may be partial; its out-of-bounds VMEM content is undefined).
    row = lax.broadcasted_iota(jnp.int32, d.shape, 0) + i * row_tile
    keep = jnp.logical_and(row < n_rows, jnp.logical_not(jnp.isnan(d)))
    d = jnp.where(keep, d, 0.0)

    acc_ref[...] += jnp.sum(d, axis=0, keepdims=True)

    @pl.when(i == pl.num_programs(0) - 1)
    def _():
        q = q_ref[...]                               # (1, Q)
        s = acc_ref[...]                             # (1, Q)
        # torch.max(q*s, (q-1)*s); nanmean of the resulting 0-d tensor is the identity.
        out_ref[...] = jnp.maximum(q * s, (q - 1.0) * s)


def _per_quantile_loss_pallas(obs2d, mod2d, q_arr):
    n_rows, nq = mod2d.shape
    row_tile = n_rows if n_rows <= _MAX_ROW_TILE else _MAX_ROW_TILE
    n_tiles = pl.cdiv(n_rows, row_tile)

    kernel = functools.partial(_pinball_kernel, row_tile=row_tile, n_rows=n_rows)
    out = pl.pallas_call(
        kernel,
        out_shape=jax.ShapeDtypeStruct((1, nq), jnp.float32),
        grid=(n_tiles,),
        in_specs=[
            pl.BlockSpec((1, nq), lambda i: (0, 0)),          # quantiles (resident)
            pl.BlockSpec((row_tile, 1), lambda i: (i, 0)),    # observed rows
            pl.BlockSpec((row_tile, nq), lambda i: (i, 0)),   # modeled rows (native)
        ],
        out_specs=pl.BlockSpec((1, nq), lambda i: (0, 0)),
        scratch_shapes=[pltpu.VMEM((1, nq), jnp.float32)],
        compiler_params=pltpu.CompilerParams(
            # The single grid axis carries the (1, Q) accumulator / output.
            dimension_semantics=("arbitrary",)),
    )(q_arr.reshape(1, nq), obs2d, mod2d)
    return out[0]                                             # (Q,)


def _per_quantile_loss_ref(obs2d, mod2d, q_arr):
    # Plain fused-jnp path (used for tiny problems and for validation).
    d = obs2d.astype(jnp.float32) - mod2d.astype(jnp.float32)
    d = jnp.where(jnp.isnan(d), 0.0, d)
    s = jnp.sum(d, axis=0)                                    # (Q,)
    return jnp.maximum(q_arr * s, (q_arr - 1.0) * s)


def changing_pinball_loss(observed, modeled, multiplier, constant=1,
                          quantiles=(0.1, 0.5, 0.9), use_pallas=None):
    nq = modeled.shape[-1]
    if len(quantiles) != nq:
        raise ValueError(
            f"len(quantiles)={len(quantiles)} must match modeled.shape[-1]={nq}")

    obs = jnp.squeeze(observed)                 # keep producer dtype; cast in-kernel
    n_rows = 1
    for s in modeled.shape[:-1]:
        n_rows *= int(s)
    if obs.size != n_rows:
        raise ValueError(
            f"observed.squeeze() has {obs.size} elements but modeled[..., i] "
            f"has {n_rows}")

    obs2d = obs.reshape(n_rows, 1)              # free reshape (contiguous)
    mod2d = modeled.reshape(n_rows, nq)         # free reshape, native (B, T, Q) layout
    q_arr = jnp.asarray(quantiles, dtype=jnp.float32)

    if use_pallas is None:
        # Tiny problems: fixed pallas_call/grid overhead dominates; let XLA fuse.
        use_pallas = n_rows * nq >= 16384
    per_q = (_per_quantile_loss_pallas if use_pallas else _per_quantile_loss_ref)(
        obs2d, mod2d, q_arr)

    # ----- multiplier scaling: pure scalar glue, stays in plain JAX -----
    # TODO(synk): the PyTorch source calls loss.size(0) on a 0-dim tensor, which
    # raises IndexError; we treat the per-quantile loss as length-1 so the multiplier
    # branches are well-defined (note 'Linear' then scales by arange(1)*c == 0).
    length = 1
    idx = jnp.arange(length, dtype=jnp.float32)
    if multiplier == 'Linear':
        mults = idx * constant
    elif multiplier == 'exponential':
        mults = jnp.exp(idx * constant)
    elif multiplier == 'quadratic':
        if not hasattr(constant, '__len__') or len(constant) < 2:
            raise ValueError("'quadratic' multiplier requires constant=(c0, c1)")
        mults = jnp.maximum(constant[1] * (idx - constant[0]) ** 2, 0.0)
    else:
        raise ValueError(f"unknown multiplier: {multiplier}")

    scaled = per_q[:, None] * mults[None, :]    # (Q, length): loss_i * multipliers
    overall = jnp.sum(scaled, axis=0)           # sum(output_losses) -> (length,)
    return overall


if __name__ == "__main__":
    key = jax.random.PRNGKey(0)
    k1, k2 = jax.random.split(key)
    B, T, Q = 2, 8, 3
    # Typical quantile-LSTM shapes: observed (B, T, 1), modeled (B, T, Q).
    observed = jax.random.normal(k1, (B, T, 1), dtype=jnp.float32)
    modeled = jax.random.normal(k2, (B, T, Q), dtype=jnp.float32)

    out = changing_pinball_loss(observed, modeled, multiplier='exponential',
                                constant=1, use_pallas=True)
    jax.block_until_ready(out)

    ref = changing_pinball_loss(observed, modeled, multiplier='exponential',
                                constant=1, use_pallas=False)
    assert jnp.allclose(out, ref, rtol=1e-5, atol=1e-5), (out, ref)

    print("KERNEL_OK")
</pallas_src>

<mosaic_0001>
module attributes {stable_mosaic.version = 11 : i64} {
  func.func @_pinball_kernel(%arg0: i32, %arg1: memref<1x3xf32, #tpu.memory_space<vmem>>, %arg2: memref<16x1xf32, #tpu.memory_space<vmem>>, %arg3: memref<16x3xf32, #tpu.memory_space<vmem>>, %arg4: memref<1x3xf32, #tpu.memory_space<vmem>>, %arg5: memref<1x3xf32, #tpu.memory_space<vmem>>) attributes {dimension_semantics = [#tpu.dimension_semantics<arbitrary>], iteration_bounds = array<i64: 1>, scalar_prefetch = 0 : i64, scratch_operands = 1 : i64, tpu.core_type = #tpu.core_type<tc>, window_params = [{pipeline_mode = #tpu.pipeline_mode<synchronous>, transform_indices = @transform_0, window_bounds = array<i64: 1, 3>}, {transform_indices = @transform_1, window_bounds = array<i64: 16, 1>}, {transform_indices = @transform_2, window_bounds = array<i64: 16, 3>}, {pipeline_mode = #tpu.pipeline_mode<synchronous>, transform_indices = @transform_3, window_bounds = array<i64: 1, 3>}]} {
    %c0_i32 = arith.constant 0 : i32
    %0 = arith.cmpi eq, %arg0, %c0_i32 : i32
    %1 = arith.extui %0 : i1 to i32
    %c0_i32_0 = arith.constant 0 : i32
    %2 = arith.cmpi ne, %1, %c0_i32_0 : i32
    scf.if %2 {
      %cst_13 = arith.constant 0.000000e+00 : f32
      %26 = vector.broadcast %cst_13 : f32 to vector<1x3xf32>
      %c0_14 = arith.constant 0 : index
      %c0_15 = arith.constant 0 : index
      %27 = vector.load %arg5[%c0_14, %c0_15] : memref<1x3xf32, #tpu.memory_space<vmem>>, vector<1x3xf32>
      tpu.vector_store %arg5[%c0_14, %c0_15], %26 {strides = array<i32>} : memref<1x3xf32, #tpu.memory_space<vmem>>, vector<1x3xf32>,
    } else {
    }
    %c0 = arith.constant 0 : index
    %c0_1 = arith.constant 0 : index
    %3 = vector.load %arg2[%c0, %c0_1] : memref<16x1xf32, #tpu.memory_space<vmem>>, vector<16x1xf32>
    %c0_2 = arith.constant 0 : index
    %c0_3 = arith.constant 0 : index
    %4 = vector.load %arg3[%c0_2, %c0_3] : memref<16x3xf32, #tpu.memory_space<vmem>>, vector<16x3xf32>
    %5 = vector.broadcast %3 : vector<16x1xf32> to vector<16x3xf32>
    %6 = arith.subf %5, %4 : vector<16x3xf32>
    %7 = tpu.iota {dimensions = array<i32: 0>} : vector<16x3xi32>
    %c16_i32 = arith.constant 16 : i32
    %8 = arith.muli %arg0, %c16_i32 : i32
    %9 = vector.broadcast %8 : i32 to vector<16x3xi32>
    %10 = arith.addi %7, %9 : vector<16x3xi32>
    %c16_i32_4 = arith.constant 16 : i32
    %11 = vector.broadcast %c16_i32_4 : i32 to vector<16x3xi32>
    %12 = arith.cmpi slt, %10, %11 : vector<16x3xi32>
    %13 = arith.cmpf one, %6, %6 : vector<16x3xf32>
    %cst = arith.constant dense<true> : vector<16x3xi1>
    %14 = arith.xori %13, %cst : vector<16x3xi1>
    %15 = arith.andi %12, %14 : vector<16x3xi1>
    %cst_5 = arith.constant 0.000000e+00 : f32
    %16 = vector.broadcast %cst_5 : f32 to vector<16x3xf32>
    %17 = arith.select %15, %6, %16 : vector<16x3xi1>, vector<16x3xf32>
    %c0_6 = arith.constant 0 : index
    %c0_7 = arith.constant 0 : index
    %18 = vector.load %arg5[%c0_6, %c0_7] : memref<1x3xf32, #tpu.memory_space<vmem>>, vector<1x3xf32>
    %cst_8 = arith.constant dense<0.000000e+00> : vector<3xf32>
    %19 = vector.multi_reduction <add>, %17, %cst_8 [0] : vector<16x3xf32> to vector<3xf32>
    %20 = vector.shape_cast %19 : vector<3xf32> to vector<1x3xf32>
    %21 = arith.addf %18, %20 : vector<1x3xf32>
    %c0_9 = arith.constant 0 : index
    %c0_10 = arith.constant 0 : index
    %22 = vector.load %arg5[%c0_9, %c0_10] : memref<1x3xf32, #tpu.memory_space<vmem>>, vector<1x3xf32>
    tpu.vector_store %arg5[%c0_9, %c0_10], %21 {strides = array<i32>} : memref<1x3xf32, #tpu.memory_space<vmem>>, vector<1x3xf32>,
    %c0_i32_11 = arith.constant 0 : i32
    %23 = arith.cmpi eq, %arg0, %c0_i32_11 : i32
    %24 = arith.extui %23 : i1 to i32
    %c0_i32_12 = arith.constant 0 : i32
    %25 = arith.cmpi ne, %24, %c0_i32_12 : i32
    scf.if %25 {
      %c0_13 = arith.constant 0 : index
      %c0_14 = arith.constant 0 : index
      %26 = vector.load %arg1[%c0_13, %c0_14] : memref<1x3xf32, #tpu.memory_space<vmem>>, vector<1x3xf32>
      %c0_15 = arith.constant 0 : index
      %c0_16 = arith.constant 0 : index
      %27 = vector.load %arg5[%c0_15, %c0_16] : memref<1x3xf32, #tpu.memory_space<vmem>>, vector<1x3xf32>
      %28 = arith.mulf %26, %27 : vector<1x3xf32>
      %cst_17 = arith.constant 1.000000e+00 : f32
      %29 = vector.broadcast %cst_17 : f32 to vector<1x3xf32>
      %30 = arith.subf %26, %29 : vector<1x3xf32>
      %31 = arith.mulf %30, %27 : vector<1x3xf32>
      %32 = arith.maximumf %28, %31 : vector<1x3xf32>
      %c0_18 = arith.constant 0 : index
      %c0_19 = arith.constant 0 : index
      %33 = vector.load %arg4[%c0_18, %c0_19] : memref<1x3xf32, #tpu.memory_space<vmem>>, vector<1x3xf32>
      tpu.vector_store %arg4[%c0_18, %c0_19], %32 {strides = array<i32>} : memref<1x3xf32, #tpu.memory_space<vmem>>, vector<1x3xf32>,
    } else {
    }
    return
  }
  func.func @transform_0(%arg0: i32) -> (i32, i32) {
    %c0_i32 = arith.constant 0 : i32
    %c0_i32_0 = arith.constant 0 : i32
    %c0_i32_1 = arith.constant 0 : i32
    return %c0_i32, %c0_i32_0 : i32, i32
  }
  func.func @transform_1(%arg0: i32) -> (i32, i32) {
    %c0_i32 = arith.constant 0 : i32
    %c0_i32_0 = arith.constant 0 : i32
    return %arg0, %c0_i32 : i32, i32
  }
  func.func @transform_2(%arg0: i32) -> (i32, i32) {
    %c0_i32 = arith.constant 0 : i32
    %c0_i32_0 = arith.constant 0 : i32
    return %arg0, %c0_i32 : i32, i32
  }
  func.func @transform_3(%arg0: i32) -> (i32, i32) {
    %c0_i32 = arith.constant 0 : i32
    %c0_i32_0 = arith.constant 0 : i32
    %c0_i32_1 = arith.constant 0 : i32
    return %c0_i32, %c0_i32_0 : i32, i32
  }
}

</mosaic_0001>

<bundles_post_ra>
// kernel: tpu_custom_call.1
= control target key start
LH: loop header
LB: loop body
LE: loop exit
PB: predicated region body
PF: predicated region fallthrough
CT: control target
= control target key end

     0   :  { %v122_v1 = vmov 0   ;;  %s176_s0 = inlined_call_operand.vmem [shape: f32[1,3], index: 0, kind: input, shape index: {}]   ;;  %s177_s1 = inlined_call_operand.vmem [shape: f32[16,1], index: 1, kind: input, shape index: {}]   ;;  %s178_s2 = inlined_call_operand.vmem [shape: f32[16,3], index: 2, kind: input, shape index: {}]   ;;  %s179_s3 = inlined_call_operand.hbm [shape: f32[1,3], index: 3, kind: output, shape index: {}]  }
   0x1   :  { %v21_v0 = vld [vmem:[%s177_s1] sm:$0xff]  ;;  %97 = vset.pattern.permute.xlu0 %v122_v1 }
   0x2   :  { %8 = vsyncpa [#allocation4], 0  ;;  %27 = vperm.xlu0 %97, %v21_v0   ;;  %v22_v2 = vld [vmem:[%s177_s1 + $0x8] sm:$0xff]  ;;  %vm19_vm0 = vcmask 16384   ;;  %v123_v3 = vmov 0.0   ;;  %v23_v4 = vld [vmem:[%s178_s2] sm:$0xff] }
   0x3   :  { %20 = vst.msk [vmem:[#allocation2] sm:$0x1] %vm19_vm0, %v123_v3  ;;  %v24_v7 = vld [vmem:[%s178_s2 + $0x8] sm:$0xff]  ;;  %vm124_vm2 = vmmov 1   ;;  %vm55_vm4 = vcmask 23552   ;;  %s125_s20 = smov [#allocation3]  }
   0x4   :  { %v71_v23 = vld [vmem:[%s176_s0] sm:$0x1]  ;;  %s84_s21 = sshll.u32 %s125_s20, 4  ;;  %s85_s21 = int_to_ptr.vmem [resolvable:$true] %s84_s21 }
   0x5   :  { %v92_v24 = vadd.f32 -1.0, %v71_v23  ;;  %s98_s22 = scalar_lea.vmem %s85_s21, 16  ;;  %s102_s23 = scalar_lea.vmem %s85_s21, 32 }
   0x6   :  { %32 = vperm.xlu0 %97, %v22_v2   ;;  %p99_p0 = scmp.ne.s32.totalorder %s85_s21, %s98_s22  ;;  %p103_p1 = scmp.lt.s32.totalorder %s85_s21, %s85_s21 }
   0x7   :  { %p104_p2 = scmp.lt.s32.totalorder %s102_s23, %s98_s22 }
   0x9   :  { %p105_p3 = por %p104_p2, %p103_p1 }
   0xa   :  { %v54_v20 = vld [vmem:[#allocation2] sm:$0x1] }
   0xb   :  { %p106_p4 = pnand %p105_p3, %p99_p0 }
  0x81   :  { %v28_v5 = vpop.permute.xlu0 %27 }
  0x82   :  { %v35_v6 = vsub.f32 %v28_v5, %v23_v4 }
  0x84   :  { %vm46_vm1 = vcmp.ne.f32.partialorder %v35_v6, %v35_v6 }
  0x85   :  { %vm48_vm3 = vmxor %vm46_vm1, %vm124_vm2  ;;  %v33_v8 = vpop.permute.xlu0 %32 }
  0x86   :  { %v36_v9 = vsub.f32 %v33_v8, %v24_v7  ;;  %v52_v10 = vsel %vm48_vm3, %v35_v6, 0.0 }
  0x87   :  { %v56_v12 = vsel %vm55_vm4, %v52_v10, 0.0 }
  0x88   :  { %vm47_vm5 = vcmp.ne.f32.partialorder %v36_v9, %v36_v9 }
  0x89   :  { %vm49_vm6 = vmxor %vm47_vm5, %vm124_vm2 }
  0x8a   :  { %v53_v11 = vsel %vm49_vm6, %v36_v9, 0.0 }
  0x8b   :  { %v57_v13 = vsel %vm55_vm4, %v53_v11, 0.0 }
  0x8c   :  { %v58_v14 = vadd.f32 %v57_v13, %v56_v12 }
  0x8e   :  { %v59_v15 = vrot.slane %v58_v14, 4 }
  0x90   :  { %v60_v16 = vadd.f32 %v59_v15, %v58_v14 }
  0x92   :  { %v61_v17 = vrot.slane %v60_v16, 2 }
  0x94   :  { %v62_v18 = vadd.f32 %v61_v17, %v60_v16 }
  0x96   :  { %v63_v19 = vrot.slane %v62_v18, 1 }
  0x98   :  { %v64_v21 = vadd.f32 %v63_v19, %v62_v18 }
  0x9a   :  { %v65_v22 = vadd.f32 %v64_v21, %v54_v20 }
  0x9c   :  { %67 = vst.msk [vmem:[#allocation2] sm:$0x1] %vm19_vm0, %v65_v22 }
  0xa3   :  { %v72_v25 = vld [vmem:[#allocation2] sm:$0x1] }
  0xa4   :  { %v73_v26 = vmul.f32 %v72_v25, %v71_v23  ;;  %v75_v27 = vmul.f32 %v92_v24, %v72_v25 }
  0xa6   :  { %v76_v28 = vmax.f32 %v73_v26, %v75_v27 }
  0xa8   :  { %77 = vst.msk [vmem:[#allocation3] sm:$0x1] %vm19_vm0, %v76_v28 }
  0xa9   :  { %109 = shalt.err (!%p106_p4)
}
  0xaa   :  { %s110_s25 = scalar_lea.hbm %s179_s3, 16 }
  0xab   :  { %p111_p5 = scmp.ne.s32.totalorder %s179_s3, %s110_s25  ;;  %p114_p6 = scmp.lt.u32.totalorder %s110_s25, %s179_s3 }
  0xad   :  { %p116_p7 = pnand %p114_p6, %p111_p5 }
  0xaf   :  { %119 = shalt.err (!%p116_p7)
}
  0xb0   :  { %87 = dma.vmem_to_hbm [thread:$0]  %s85_s21, 16, %s179_s3, [#allocation4]  }
  0xb1   :  { %120 = dma.done.wait [#allocation4], 16  }
  0xb2   :  { %121 = vsyncadd [#allocation4], 4294967280 }
  0xb3   :  { %91 = vsyncpa [#allocation4], 1 }

</bundles_post_ra>
